<compile_context>
chip_gen: v7x
topology: tpu7x:2x2x1
jax: 0.10.0
libtpu: 0.0.40
codegen_flags: <defaults>
</compile_context>

<pallas_src>
import functools

import jax
import jax.numpy as jnp
from jax.experimental import pallas as pl
from jax.experimental.pallas import tpu as pltpu

_LANE = 128      # vreg lane width
_SUBLANE = 8     # vreg sublane height (f32)


def _round_up(x, m):
    return ((x + m - 1) // m) * m


def duck_fused_kernel(x_ref, wf_ref, bf_ref, o0_ref, o1_ref, *, n0_pad):
    """Fused forward of both sub-models on one M-tile.

    x_ref : [TM, K]          input rows for this grid step
    wf_ref: [K, N0p + N1p]   concat(pad(W0.T), pad(W1.T)) (lane-padded per model)
    bf_ref: [1, N0p + N1p]   concat(pad(b0), pad(b1))
    o0_ref: [TM, N0p]        relu(x @ W0.T + b0), lane-padded
    o1_ref: [TM, N1p]        tanh(x @ W1.T + b1), lane-padded
    """
    # One MXU matmul for both sub-models + one fused bias add.
    y = jnp.dot(x_ref[...], wf_ref[...],
                preferred_element_type=jnp.float32) + bf_ref[...]
    # Static, lane-aligned slices (n0_pad is a multiple of 128): no relayout,
    # no iota/compare/select, and tanh (EUP) only touches its own lanes.
    o0_ref[...] = jnp.maximum(y[:, :n0_pad], 0.0).astype(o0_ref.dtype)
    o1_ref[...] = jnp.tanh(y[:, n0_pad:]).astype(o1_ref.dtype)


def prepare_duck_params(w0, b0, w1, b1):
    """One-time parameter prep (cache the result; not part of the hot path).

    Takes nn.Linear-layout parameters (W:[out,in], b:[out]) and returns the
    fused, transposed weight [K, N0_pad + N1_pad] with each sub-model padded
    to a 128-lane multiple, plus the matching fused bias [1, N0_pad + N1_pad].
    Padded lanes carry zero weight/bias (exact zeros / tanh(0)=0 in the pad).

    NOTE: an opt-in bf16 mode (cast wf/x to bf16, accumulate in f32) would
    roughly triple MXU throughput and halve x/wf traffic; kept f32 here to
    match the 1e-5 reference tolerance.
    """
    n0, k = w0.shape
    n1, _ = w1.shape
    n0_pad = _round_up(n0, _LANE)
    n1_pad = _round_up(n1, _LANE)

    w0t = jnp.pad(w0.T, ((0, 0), (0, n0_pad - n0)))            # [K, N0_pad]
    w1t = jnp.pad(w1.T, ((0, 0), (0, n1_pad - n1)))            # [K, N1_pad]
    wf = jnp.concatenate([w0t, w1t], axis=1)                   # [K, N0p+N1p]

    b0p = jnp.pad(b0, (0, n0_pad - n0))
    b1p = jnp.pad(b1, (0, n1_pad - n1))
    bf = jnp.concatenate([b0p, b1p]).reshape(1, n0_pad + n1_pad)

    return wf, bf, n0, n1, n0_pad, n1_pad


def _choose_tm(m, k, n_pad, vmem_budget_bytes):
    """Adaptive M-tile: minimize padding waste, fit VMEM, prefer >=2 grid steps."""
    best = None
    for tm in (512, 256, 128, 64, 32, 16, 8):
        if tm > _round_up(m, _SUBLANE):
            continue
        # double-buffered x + double-buffered outputs + (conservatively 2x) weights/bias
        fp = 4 * (2 * tm * k + 2 * tm * n_pad + 2 * (k * n_pad + n_pad))
        if fp > vmem_budget_bytes:
            continue
        m_pad = _round_up(m, tm)
        waste = m_pad - m
        # Penalize grid=(1,) when there is enough work to split across the two
        # v7x TensorCores; tie-break toward the larger tile.
        single_core_penalty = 1 if (m_pad // tm < 2 and m > 128) else 0
        score = (waste, single_core_penalty, -tm)
        if best is None or score < best[0]:
            best = (score, tm)
    if best is None:
        return max(_SUBLANE, _round_up(min(m, _SUBLANE), _SUBLANE))
    return best[1]


def duck_model_forward(x, wf, bf, n0, n1, n0_pad, n1_pad):
    """DuckModel.forward: returns a tuple with one output per sub-model."""
    m, k = x.shape
    n_pad = n0_pad + n1_pad
    assert wf.shape == (k, n_pad)

    # TODO(synk): add an N grid axis (tile the fused weight over lanes) once
    # K*n_pad*4 no longer fits VMEM (e.g. H >= 4096 f32); irrelevant here.

    # Keep the per-tile footprint safe on every generation (v5e scoped default
    # 16 MiB, v7x physical 64 MiB) -- we raise the scoped limit explicitly below.
    vmem_budget = 40 << 20
    tm = _choose_tm(m, k, n_pad, vmem_budget)
    m_pad = _round_up(m, tm)
    if m_pad != m:
        x = jnp.pad(x, ((0, m_pad - m), (0, 0)))
    grid_m = m_pad // tm

    footprint = 4 * (2 * tm * k + 2 * tm * n0_pad + 2 * tm * n1_pad
                     + 2 * (k * n_pad + n_pad))
    vmem_limit = int(min(64 << 20, max(footprint * 3 // 2 + (1 << 20), 2 << 20)))

    cost = pl.CostEstimate(
        flops=2 * m_pad * k * n_pad,
        transcendentals=m_pad * n1_pad,          # tanh only on sub-model 1 lanes
        bytes_accessed=4 * (m_pad * k + k * n_pad + n_pad + m_pad * n_pad),
    )

    o0, o1 = pl.pallas_call(
        functools.partial(duck_fused_kernel, n0_pad=n0_pad),
        out_shape=(
            jax.ShapeDtypeStruct((m_pad, n0_pad), jnp.float32),
            jax.ShapeDtypeStruct((m_pad, n1_pad), jnp.float32),
        ),
        grid=(grid_m,),
        in_specs=[
            # x streams over M (auto double-buffered); K is full-extent.
            pl.BlockSpec((tm, k), lambda i: (i, 0)),
            # fused weight / bias: constant index_map -> resident across grid.
            pl.BlockSpec((k, n_pad), lambda i: (0, 0)),
            pl.BlockSpec((1, n_pad), lambda i: (0, 0)),
        ],
        out_specs=[
            pl.BlockSpec((tm, n0_pad), lambda i: (i, 0)),
            pl.BlockSpec((tm, n1_pad), lambda i: (i, 0)),
        ],
        compiler_params=pltpu.CompilerParams(
            dimension_semantics=("parallel",),
            vmem_limit_bytes=vmem_limit,
        ),
        cost_estimate=cost,
    )(x, wf, bf)

    # Strip the lane / row padding (no-op slices when shapes already align).
    out0 = o0 if (m_pad == m and n0_pad == n0) else o0[:m, :n0]
    out1 = o1 if (m_pad == m and n1_pad == n1) else o1[:m, :n1]
    return (out0, out1)


if __name__ == "__main__":
    batch, hidden = 8, 32

    key = jax.random.PRNGKey(0)
    k_x, k_w0, k_b0, k_w1, k_b1 = jax.random.split(key, 5)

    x = jax.random.normal(k_x, (batch, hidden), dtype=jnp.float32)
    # nn.Linear-style parameter shapes: W [out, in], b [out]
    w0 = jax.random.normal(k_w0, (hidden, hidden), dtype=jnp.float32) * 0.1
    b0 = jax.random.normal(k_b0, (hidden,), dtype=jnp.float32) * 0.1
    w1 = jax.random.normal(k_w1, (hidden, hidden), dtype=jnp.float32) * 0.1
    b1 = jax.random.normal(k_b1, (hidden,), dtype=jnp.float32) * 0.1

    # One-time prep (would be cached alongside the model in real use).
    wf, bf, n0, n1, n0_pad, n1_pad = prepare_duck_params(w0, b0, w1, b1)

    outs = duck_model_forward(x, wf, bf, n0, n1, n0_pad, n1_pad)
    outs = jax.block_until_ready(outs)

    # reference check in plain JAX (same math the torch sub-models would do)
    ref0 = jnp.maximum(x @ w0.T + b0, 0.0)
    ref1 = jnp.tanh(x @ w1.T + b1)
    assert isinstance(outs, tuple) and len(outs) == 2
    assert outs[0].shape == ref0.shape and outs[1].shape == ref1.shape
    assert jnp.allclose(outs[0], ref0, atol=1e-5, rtol=1e-5)
    assert jnp.allclose(outs[1], ref1, atol=1e-5, rtol=1e-5)

    print("KERNEL_OK")
</pallas_src>

<mosaic_0001>
module attributes {stable_mosaic.version = 11 : i64} {
  func.func @duck_fused_kernel(%arg0: i32, %arg1: memref<8x32xf32, #tpu.memory_space<vmem>>, %arg2: memref<32x256xf32, #tpu.memory_space<vmem>>, %arg3: memref<1x256xf32, #tpu.memory_space<vmem>>, %arg4: memref<8x128xf32, #tpu.memory_space<vmem>>, %arg5: memref<8x128xf32, #tpu.memory_space<vmem>>) attributes {dimension_semantics = [#tpu.dimension_semantics<parallel>], iteration_bounds = array<i64: 1>, scalar_prefetch = 0 : i64, scratch_operands = 0 : i64, tpu.core_type = #tpu.core_type<tc>, window_params = [{transform_indices = @transform_0, window_bounds = array<i64: 8, 32>}, {pipeline_mode = #tpu.pipeline_mode<synchronous>, transform_indices = @transform_1, window_bounds = array<i64: 32, 256>}, {pipeline_mode = #tpu.pipeline_mode<synchronous>, transform_indices = @transform_2, window_bounds = array<i64: 1, 256>}, {transform_indices = @transform_3, window_bounds = array<i64: 8, 128>}, {transform_indices = @transform_4, window_bounds = array<i64: 8, 128>}]} {
    %c0 = arith.constant 0 : index
    %c0_0 = arith.constant 0 : index
    %0 = vector.load %arg1[%c0, %c0_0] : memref<8x32xf32, #tpu.memory_space<vmem>>, vector<8x32xf32>
    %c0_1 = arith.constant 0 : index
    %c0_2 = arith.constant 0 : index
    %1 = vector.load %arg2[%c0_1, %c0_2] : memref<32x256xf32, #tpu.memory_space<vmem>>, vector<32x256xf32>
    %cst = arith.constant dense<0.000000e+00> : vector<8x256xf32>
    %2 = tpu.matmul %0, %1, %cst {dimension_numbers = #tpu.dot_dimension_numbers<[1], [0], [0], [1], [0, 0, 1, 1], [], []>} : vector<8x32xf32>, vector<32x256xf32>, vector<8x256xf32> -> vector<8x256xf32>
    %c0_3 = arith.constant 0 : index
    %c0_4 = arith.constant 0 : index
    %3 = vector.load %arg3[%c0_3, %c0_4] : memref<1x256xf32, #tpu.memory_space<vmem>>, vector<1x256xf32>
    %4 = vector.broadcast %3 : vector<1x256xf32> to vector<8x256xf32>
    %5 = arith.addf %2, %4 : vector<8x256xf32>
    %6 = vector.extract_strided_slice %5 {offsets = [0, 0], sizes = [8, 128], strides = [1, 1]} : vector<8x256xf32> to vector<8x128xf32>
    %cst_5 = arith.constant 0.000000e+00 : f32
    %7 = vector.broadcast %cst_5 : f32 to vector<8x128xf32>
    %8 = arith.maximumf %6, %7 : vector<8x128xf32>
    %c0_6 = arith.constant 0 : index
    %c0_7 = arith.constant 0 : index
    %9 = vector.load %arg4[%c0_6, %c0_7] : memref<8x128xf32, #tpu.memory_space<vmem>>, vector<8x128xf32>
    tpu.vector_store %arg4[%c0_6, %c0_7], %8 {strides = array<i32>} : memref<8x128xf32, #tpu.memory_space<vmem>>, vector<8x128xf32>,
    %10 = vector.extract_strided_slice %5 {offsets = [0, 128], sizes = [8, 128], strides = [1, 1]} : vector<8x256xf32> to vector<8x128xf32>
    %11 = math.tanh %10 : vector<8x128xf32>
    %c0_8 = arith.constant 0 : index
    %c0_9 = arith.constant 0 : index
    %12 = vector.load %arg5[%c0_8, %c0_9] : memref<8x128xf32, #tpu.memory_space<vmem>>, vector<8x128xf32>
    tpu.vector_store %arg5[%c0_8, %c0_9], %11 {strides = array<i32>} : memref<8x128xf32, #tpu.memory_space<vmem>>, vector<8x128xf32>,
    return
  }
  func.func @transform_0(%arg0: i32) -> (i32, i32) {
    %c0_i32 = arith.constant 0 : i32
    %c0_i32_0 = arith.constant 0 : i32
    return %arg0, %c0_i32 : i32, i32
  }
  func.func @transform_1(%arg0: i32) -> (i32, i32) {
    %c0_i32 = arith.constant 0 : i32
    %c0_i32_0 = arith.constant 0 : i32
    %c0_i32_1 = arith.constant 0 : i32
    return %c0_i32, %c0_i32_0 : i32, i32
  }
  func.func @transform_2(%arg0: i32) -> (i32, i32) {
    %c0_i32 = arith.constant 0 : i32
    %c0_i32_0 = arith.constant 0 : i32
    %c0_i32_1 = arith.constant 0 : i32
    return %c0_i32, %c0_i32_0 : i32, i32
  }
  func.func @transform_3(%arg0: i32) -> (i32, i32) {
    %c0_i32 = arith.constant 0 : i32
    %c0_i32_0 = arith.constant 0 : i32
    return %arg0, %c0_i32 : i32, i32
  }
  func.func @transform_4(%arg0: i32) -> (i32, i32) {
    %c0_i32 = arith.constant 0 : i32
    %c0_i32_0 = arith.constant 0 : i32
    return %arg0, %c0_i32 : i32, i32
  }
}

</mosaic_0001>

<bundles_post_ra>
// kernel: tpu_custom_call.1
= control target key start
LH: loop header
LB: loop body
LE: loop exit
PB: predicated region body
PF: predicated region fallthrough
CT: control target
= control target key end

     0   :  { %10 = vsyncpa [#allocation3], 0  ;;  %s378_s0 = inlined_call_operand.hbm [shape: f32[8,32], index: 0, kind: input, shape index: {}]   ;;  %s379_s1 = inlined_call_operand.hbm [shape: f32[32,256], index: 1, kind: input, shape index: {}]   ;;  %s380_s2 = inlined_call_operand.vmem [shape: f32[1,256], index: 2, kind: input, shape index: {}]   ;;  %s381_s3 = inlined_call_operand.hbm [shape: f32[8,128], index: 3, kind: output, shape index: {0}]   ;;  %s382_s4 = inlined_call_operand.hbm [shape: f32[8,128], index: 4, kind: output, shape index: {1}]  }
   0x1   :  { %11 = vsyncpa [#allocation6], 0 }
   0x2   :  { %12 = vsyncpa [#allocation4], 0 }
   0x3   :  { %13 = vsyncpa [#allocation9], 0  ;;  %s288_s15 = smov [#allocation2]   ;;  %s289_s17 = smov [#allocation5]  }
   0x4   :  { %s20_s16 = sshll.u32 %s288_s15, 4  ;;  %s29_s18 = sshll.u32 %s289_s17, 4  ;;  %s21_s16 = int_to_ptr.vmem [resolvable:$true] %s20_s16  ;;  %s320_s18 = int_to_ptr.vmem [resolvable:$true] %s29_s18 }
   0x5   :  { %s192_s21 = scalar_lea.hbm %s378_s0, 128 }
   0x6   :  { %p193_p0 = scmp.ne.s32.totalorder %s378_s0, %s192_s21  ;;  %p196_p1 = scmp.lt.u32.totalorder %s192_s21, %s378_s0 }
   0x8   :  { %p198_p2 = pnand %p196_p1, %p193_p0 }
   0xa   :  { %201 = shalt.err (!%p198_p2)
}
   0xb   :  { %s202_s26 = scalar_lea.vmem %s21_s16, 128  ;;  %p207_p4 = scmp.lt.s32.totalorder %s21_s16, %s21_s16 }
   0xc   :  { %p203_p3 = scmp.ne.s32.totalorder %s21_s16, %s202_s26  ;;  %p208_p5 = scmp.lt.s32.totalorder %s202_s26, %s202_s26 }
   0xe   :  { %p209_p6 = por %p208_p5, %p207_p4 }
  0x10   :  { %p210_p7 = pnand %p209_p6, %p203_p3 }
  0x12   :  { %213 = shalt.err (!%p210_p7)
}
  0x13   :  { %23 = dma.hbm_to_vmem [thread:$0]  %s378_s0, 128, %s21_s16, [#allocation3]  }
  0x14   :  { %s214_s5 = scalar_lea.hbm %s379_s1, 1024 }
  0x15   :  { %p215_p8 = scmp.ne.s32.totalorder %s379_s1, %s214_s5  ;;  %p218_p9 = scmp.lt.u32.totalorder %s214_s5, %s379_s1 }
  0x17   :  { %p220_p10 = pnand %p218_p9, %p215_p8 }
  0x19   :  { %223 = shalt.err (!%p220_p10)
}
  0x1a   :  { %s224_s10 = scalar_lea.vmem %s320_s18, 1024  ;;  %p229_p12 = scmp.lt.s32.totalorder %s320_s18, %s320_s18 }
  0x1b   :  { %p225_p11 = scmp.ne.s32.totalorder %s320_s18, %s224_s10  ;;  %p230_p13 = scmp.lt.s32.totalorder %s224_s10, %s224_s10 }
  0x1d   :  { %p231_p0 = por %p230_p13, %p229_p12 }
  0x1f   :  { %p232_p1 = pnand %p231_p0, %p225_p11 }
  0x21   :  { %235 = shalt.err (!%p232_p1)
}
  0x22   :  { %s290_s0 = smov 256   ;;  %s291_s11 = smov 16  }
  0x23   :  { %35 = dma.hbm_to_vmem [thread:$0]  %s379_s1, 1024, %s320_s18, [#allocation6], %s290_s0, %s290_s0, %s291_s11  }
  0x24   :  { %280 = dma.done.wait [#allocation3], 128  }
  0x25   :  { %281 = vsyncadd [#allocation3], 4294967168 }
  0x26   :  { %282 = dma.done.wait [#allocation6], 1024  }
  0x27   :  { %283 = vsyncadd [#allocation6], 4294966272  ;;  %v292_v0 = vmov 0.0   ;;  %v46_v1 = vld [vmem:[#allocation5 + $0x8] sm:$0xff]  ;;  %v48_v2 = vld [vmem:[#allocation5 + $0x18] sm:$0xff]  ;;  %vm65_vm0 = vcmask 261120   ;;  %v55_v14 = vlaneseq }
  0x28   :  { %133 = vmatprep.mubr.f32.mxu0 %v292_v0  ;;  %v45_v3 = vld [vmem:[#allocation5] sm:$0xff]  ;;  %v175_v4 = vpack.c.bf16 %v48_v2, %v46_v1  ;;  %v47_v5 = vld [vmem:[#allocation5 + $0x10] sm:$0xff]  ;;  %v50_v6 = vld [vmem:[#allocation5 + $0x28] sm:$0xff]  ;;  %s293_s15 = smov [#allocation7]  }
  0x29   :  { %v52_v7 = vld [vmem:[#allocation5 + $0x38] sm:$0xff]  ;;  %v177_v8 = vpack.c.bf16 %v47_v5, %v45_v3  ;;  %v49_v10 = vld [vmem:[#allocation5 + $0x20] sm:$0xff]  ;;  %v51_v11 = vld [vmem:[#allocation5 + $0x30] sm:$0xff]  ;;  %v56_v15 = vshrl.u32 %v55_v14, 7  ;;  %s150_s16 = sshll.u32 %s293_s15, 4  ;;  %s151_s16 = int_to_ptr.vmem [resolvable:$true] %s150_s16 }
  0x2a   :  { %v179_v9 = vpack.c.bf16 %v52_v7, %v50_v6  ;;  %176 = vmatprep.subr.bf16.mxu0 %v175_v4  ;;  %v181_v12 = vpack.c.bf16 %v51_v11, %v49_v10  ;;  %v44_v13 = vld [vmem:[#allocation2] sm:$0xff]  ;;  %s236_s17 = scalar_lea.vmem %s151_s16, 128  ;;  %p241_p3 = scmp.lt.s32.totalorder %s151_s16, %s151_s16 }
  0x2b   :  { %178 = vmatpush1.bf16.msra.mxu0 %v177_v8  ;;  %v57_v16 = vsub.s32 0, %v56_v15  ;;  %v53_v17 = vld [vmem:[%s380_s2] sm:$0x3]  ;;  %v61_v18 = vsub.s32 1, %v56_v15  ;;  %p237_p2 = scmp.ne.s32.totalorder %s151_s16, %s236_s17  ;;  %p242_p4 = scmp.lt.s32.totalorder %s236_s17, %s236_s17 }
  0x2c   :  { %180 = vmatprep.subr.bf16.mxu0 %v179_v9 }
  0x2d   :  { %v58_v19 = vrot.slane %v53_v17, %v57_v16  ;;  %v62_v20 = vrot.slane %v53_v17, %v61_v18  ;;  %p243_p5 = por %p242_p4, %p241_p3 }
  0x2f   :  { %182 = vmatpush1.bf16.msra.mxu0 %v181_v12  ;;  %p244_p6 = pnand %p243_p5, %p237_p2 }
  0x32   :  { %174 = vmatmul.mubr.msk.f32.vlgmr.msra.gmra.mrb[0].mxu0 %vm65_vm0, %v44_v13 }
 0x105   :  { %v135_v21 = vpop.f32.mrb[0].mxu0 }
 0x106   :  { %v136_v22 = vadd.f32 %v135_v21, %v58_v19  ;;  %v137_v23 = vpop.f32.mrb[1].mxu0 }
 0x107   :  { %v138_v24 = vadd.f32 %v137_v23, %v62_v20 }
 0x108   :  { %v140_v25 = vmax.f32 %v136_v22, 0.0 }
 0x109   :  { %190 = vtanh.f32 %v138_v24 }
 0x10a   :  { %141 = vst [vmem:[#allocation7] sm:$0xff] %v140_v25 }
 0x10b   :  { %247 = shalt.err (!%p244_p6)
}
 0x10c   :  { %s248_s19 = scalar_lea.hbm %s381_s3, 128 }
 0x10d   :  { %p249_p7 = scmp.ne.s32.totalorder %s381_s3, %s248_s19  ;;  %p252_p8 = scmp.lt.u32.totalorder %s248_s19, %s381_s3 }
 0x10f   :  { %p254_p9 = pnand %p252_p8, %p249_p7 }
 0x111   :  { %257 = shalt.err (!%p254_p9)
}
 0x112   :  { %153 = dma.vmem_to_hbm [thread:$0]  %s151_s16, 128, %s381_s3, [#allocation4]  }
 0x113   :  { %s294_s26 = smov [#allocation8]   ;;  %v191_v26 = vpop.eup %190 }
 0x114   :  { %s160_s27 = sshll.u32 %s294_s26, 4  ;;  %143 = vst [vmem:[#allocation8] sm:$0xff] %v191_v26  ;;  %s161_s27 = int_to_ptr.vmem [resolvable:$true] %s160_s27 }
 0x115   :  { %s258_s28 = scalar_lea.vmem %s161_s27, 128  ;;  %p263_p11 = scmp.lt.s32.totalorder %s161_s27, %s161_s27 }
 0x116   :  { %p259_p10 = scmp.ne.s32.totalorder %s161_s27, %s258_s28  ;;  %p264_p12 = scmp.lt.s32.totalorder %s258_s28, %s258_s28 }
 0x118   :  { %p265_p13 = por %p264_p12, %p263_p11 }
 0x11a   :  { %p266_p0 = pnand %p265_p13, %p259_p10 }
 0x11c   :  { %269 = shalt.err (!%p266_p0)
}
 0x11d   :  { %s270_s5 = scalar_lea.hbm %s382_s4, 128 }
 0x11e   :  { %p271_p1 = scmp.ne.s32.totalorder %s382_s4, %s270_s5  ;;  %p274_p2 = scmp.lt.u32.totalorder %s270_s5, %s382_s4 }
 0x120   :  { %p276_p3 = pnand %p274_p2, %p271_p1 }
 0x122   :  { %279 = shalt.err (!%p276_p3)
}
 0x123   :  { %163 = dma.vmem_to_hbm [thread:$0]  %s161_s27, 128, %s382_s4, [#allocation9]  }
 0x124   :  { %284 = dma.done.wait [#allocation4], 128  }
 0x125   :  { %285 = vsyncadd [#allocation4], 4294967168 }
 0x126   :  { %286 = dma.done.wait [#allocation9], 128  }
 0x127   :  { %287 = vsyncadd [#allocation9], 4294967168 }
 0x128   :  { %170 = vsyncpa [#allocation3], 1 }
 0x129   :  { %171 = vsyncpa [#allocation6], 1 }
 0x12a   :  { %172 = vsyncpa [#allocation4], 1 }
 0x12b   :  { %173 = vsyncpa [#allocation9], 1 }

</bundles_post_ra>
